<compile_context>
chip_gen: v5e
topology: v5e:2x2
jax: 0.10.0
libtpu: 0.0.40
codegen_flags: <defaults>
</compile_context>

<pallas_src>
import functools

import numpy as np
import jax
import jax.numpy as jnp
from jax.experimental import pallas as pl
from jax.experimental.pallas import tpu as pltpu

_LANES = 128
_EPS = 1e-7
_IGNORE_INDEX = -100.0


def _round_up(x: int, m: int) -> int:
    return ((x + m - 1) // m) * m


def _partials_kernel(preds_ref, targets_ref, out_ref, *, block_rows, total, mask_needed):
    x = preds_ref[...].astype(jnp.float32)
    t = targets_ref[...].astype(jnp.float32)

    # 3 EUP ops per element: exp, divide(recip), log.  e = exp(-|x|) is shared
    # between the sigmoid and the BCE softplus term.  (Exact divide is kept so the
    # result matches the PyTorch/JAX reference tightly; pl.reciprocal(approx=True)
    # would be slightly faster at ~1e-4 relative accuracy.)
    e = jnp.exp(-jnp.abs(x))
    inv = 1.0 / (1.0 + e)
    p = jnp.where(x >= 0.0, inv, e * inv)            # sigmoid(x)
    # softplus(-|x|); log(1+e) == log1p(e) within f32 for |x| <~ 16 (e >= 2^-24).
    softplus = jnp.log(1.0 + e)
    not_ignored = (t != _IGNORE_INDEX).astype(jnp.float32)
    bce = (jnp.maximum(x, 0.0) - x * t + softplus) * not_ignored

    if mask_needed:
        i = pl.program_id(0)
        rows = jax.lax.broadcasted_iota(jnp.int32, (block_rows, _LANES), 0)
        lanes = jax.lax.broadcasted_iota(jnp.int32, (block_rows, _LANES), 1)
        flat_idx = (rows + i * block_rows) * _LANES + lanes
        m = (flat_idx < total).astype(jnp.float32)
        p = p * m
        t = t * m
        bce = bce * m

    # Reduce over the sublane/row axis only, keep the 128 lanes (lane-dense store);
    # the cross-lane reduce happens once, outside the kernel.
    s_inter = jnp.sum(p * t, axis=0, keepdims=True)   # (1, 128)
    s_p = jnp.sum(p, axis=0, keepdims=True)           # (1, 128)
    s_t = jnp.sum(t, axis=0, keepdims=True)           # (1, 128)
    s_bce = jnp.sum(bce, axis=0, keepdims=True)       # (1, 128)
    out_ref[...] = jnp.concatenate([s_inter, s_p, s_t, s_bce], axis=0)[None, :, :]


@functools.partial(jax.jit, static_argnames=("alpha", "beta", "block_rows"))
def combined_loss(preds, targets, alpha: float = 1.0, beta: float = 1.0,
                  block_rows: int = 2048):
    total = int(np.prod(preds.shape))
    rows = -(-total // _LANES)                            # cdiv(total, 128)
    br = _round_up(min(block_rows, _round_up(rows, 8)), 8)
    rows_padded = _round_up(rows, br)
    padded_total = rows_padded * _LANES
    assert padded_total < 2**31, "int32 flat index would overflow"
    num_blocks = rows_padded // br
    mask_needed = padded_total != total

    # Stream inputs in their native dtype (bf16/int8 targets are fine); cast in-kernel.
    x = preds.reshape(-1)
    t = targets.reshape(-1)
    if mask_needed:
        x = jnp.pad(x, (0, padded_total - total))
        t = jnp.pad(t, (0, padded_total - total))
    x2 = x.reshape(rows_padded, _LANES)
    t2 = t.reshape(rows_padded, _LANES)

    kernel = functools.partial(_partials_kernel, block_rows=br, total=total,
                               mask_needed=mask_needed)

    partials = pl.pallas_call(
        kernel,
        out_shape=jax.ShapeDtypeStruct((num_blocks, 4, _LANES), jnp.float32),
        grid_spec=pltpu.PrefetchScalarGridSpec(
            num_scalar_prefetch=0,
            grid=(num_blocks,),
            in_specs=[
                pl.BlockSpec((br, _LANES), lambda i: (i, 0)),
                pl.BlockSpec((br, _LANES), lambda i: (i, 0)),
            ],
            out_specs=pl.BlockSpec((1, 4, _LANES), lambda i: (i, 0, 0)),
        ),
        compiler_params=pltpu.CompilerParams(
            dimension_semantics=("parallel",),   # independent blocks -> megacore on v7x
        ),
    )(x2, t2)

    # Tiny finalize (exact math) in JAX: 4 scalars from (num_blocks, 4, 128).
    sums = jnp.sum(partials, axis=(0, 2))
    inter, p_sum, t_sum, bce_sum = sums[0], sums[1], sums[2], sums[3]
    card = p_sum + t_sum
    score = (2.0 * inter) / jnp.maximum(card, _EPS)
    dice_loss = (1.0 - score) * (t_sum > 0.0).astype(jnp.float32)
    bce_mean = bce_sum / jnp.float32(total)     # SoftBCE mean over ALL elements
    return alpha * dice_loss + beta * bce_mean


def _reference(preds, targets, alpha=1.0, beta=1.0):
    """Pure-JAX mirror of smp DiceLoss(binary) + SoftBCEWithLogitsLoss."""
    x = preds.astype(jnp.float32)
    t = targets.astype(jnp.float32)
    bs = x.shape[0]
    p = jax.nn.sigmoid(x).reshape(bs, 1, -1)
    tt = t.reshape(bs, 1, -1)
    inter = jnp.sum(p * tt, axis=(0, 2))
    card = jnp.sum(p + tt, axis=(0, 2))
    score = (2.0 * inter) / jnp.clip(card, 1e-7, None)
    dice = jnp.mean((1.0 - score) * (jnp.sum(tt, axis=(0, 2)) > 0))
    bce = jnp.maximum(x, 0.0) - x * t + jnp.log1p(jnp.exp(-jnp.abs(x)))
    bce = jnp.mean(bce * (t != -100.0))
    return alpha * dice + beta * bce


if __name__ == "__main__":
    key = jax.random.PRNGKey(0)
    k1, k2, k3, k4 = jax.random.split(key, 4)

    # NCHW binary segmentation: batch=2, channels=1, spatial=16x16 (logits + 0/1 mask)
    preds = jax.random.normal(k1, (2, 1, 16, 16), dtype=jnp.float32)
    targets = (jax.random.uniform(k2, (2, 1, 16, 16)) > 0.5).astype(jnp.float32)

    loss = combined_loss(preds, targets, alpha=1.0, beta=1.0)
    loss = jax.block_until_ready(loss)
    ref = _reference(preds, targets, 1.0, 1.0)
    assert np.allclose(np.asarray(loss), np.asarray(ref), rtol=1e-5, atol=1e-5), (loss, ref)

    # Ragged size + multi-block path (forces grid > 1 and the iota padding mask).
    preds2 = jax.random.normal(k3, (3, 1, 50, 50), dtype=jnp.float32)
    targets2 = (jax.random.uniform(k4, (3, 1, 50, 50)) > 0.5).astype(jnp.float32)
    loss2 = combined_loss(preds2, targets2, alpha=0.7, beta=1.3, block_rows=16)
    loss2 = jax.block_until_ready(loss2)
    ref2 = _reference(preds2, targets2, 0.7, 1.3)
    assert np.allclose(np.asarray(loss2), np.asarray(ref2), rtol=1e-5, atol=1e-5), (loss2, ref2)

    print("KERNEL_OK")
</pallas_src>

<mosaic_0001>
module attributes {stable_mosaic.version = 11 : i64} {
  func.func @_partials_kernel(%arg0: i32, %arg1: memref<8x128xf32, #tpu.memory_space<vmem>>, %arg2: memref<8x128xf32, #tpu.memory_space<vmem>>, %arg3: memref<1x4x128xf32, #tpu.memory_space<vmem>>) attributes {dimension_semantics = [#tpu.dimension_semantics<parallel>], iteration_bounds = array<i64: 1>, scalar_prefetch = 0 : i64, scratch_operands = 0 : i64, tpu.core_type = #tpu.core_type<tc>, window_params = [{transform_indices = @transform_0, window_bounds = array<i64: 8, 128>}, {transform_indices = @transform_1, window_bounds = array<i64: 8, 128>}, {transform_indices = @transform_2, window_bounds = array<i64: 1, 4, 128>}]} {
    %c0 = arith.constant 0 : index
    %c0_0 = arith.constant 0 : index
    %0 = vector.load %arg1[%c0, %c0_0] : memref<8x128xf32, #tpu.memory_space<vmem>>, vector<8x128xf32>
    %c0_1 = arith.constant 0 : index
    %c0_2 = arith.constant 0 : index
    %1 = vector.load %arg2[%c0_1, %c0_2] : memref<8x128xf32, #tpu.memory_space<vmem>>, vector<8x128xf32>
    %2 = math.absf %0 : vector<8x128xf32>
    %cst = arith.constant 0.000000e+00 : f32
    %3 = vector.broadcast %cst : f32 to vector<8x128xf32>
    %4 = arith.subf %3, %2 : vector<8x128xf32>
    %5 = math.exp %4 : vector<8x128xf32>
    %cst_3 = arith.constant 1.000000e+00 : f32
    %6 = vector.broadcast %cst_3 : f32 to vector<8x128xf32>
    %7 = arith.addf %6, %5 : vector<8x128xf32>
    %cst_4 = arith.constant 1.000000e+00 : f32
    %8 = vector.broadcast %cst_4 : f32 to vector<8x128xf32>
    %9 = arith.divf %8, %7 : vector<8x128xf32>
    %cst_5 = arith.constant 0.000000e+00 : f32
    %10 = vector.broadcast %cst_5 : f32 to vector<8x128xf32>
    %11 = arith.cmpf oge, %0, %10 : vector<8x128xf32>
    %12 = arith.mulf %5, %9 : vector<8x128xf32>
    %13 = arith.select %11, %9, %12 : vector<8x128xi1>, vector<8x128xf32>
    %cst_6 = arith.constant 1.000000e+00 : f32
    %14 = vector.broadcast %cst_6 : f32 to vector<8x128xf32>
    %15 = arith.addf %14, %5 : vector<8x128xf32>
    %16 = math.log %15 : vector<8x128xf32>
    %cst_7 = arith.constant -1.000000e+02 : f32
    %17 = vector.broadcast %cst_7 : f32 to vector<8x128xf32>
    %18 = arith.cmpf one, %1, %17 : vector<8x128xf32>
    %19 = arith.extui %18 : vector<8x128xi1> to vector<8x128xi32>
    %20 = arith.sitofp %19 : vector<8x128xi32> to vector<8x128xf32>
    %cst_8 = arith.constant 0.000000e+00 : f32
    %21 = vector.broadcast %cst_8 : f32 to vector<8x128xf32>
    %22 = arith.maximumf %0, %21 : vector<8x128xf32>
    %23 = arith.mulf %0, %1 : vector<8x128xf32>
    %24 = arith.subf %22, %23 : vector<8x128xf32>
    %25 = arith.addf %24, %16 : vector<8x128xf32>
    %26 = arith.mulf %25, %20 : vector<8x128xf32>
    %27 = tpu.iota {dimensions = array<i32: 0>} : vector<8x128xi32>
    %28 = tpu.iota {dimensions = array<i32: 1>} : vector<8x128xi32>
    %c8_i32 = arith.constant 8 : i32
    %29 = arith.muli %arg0, %c8_i32 : i32
    %30 = vector.broadcast %29 : i32 to vector<8x128xi32>
    %31 = arith.addi %27, %30 : vector<8x128xi32>
    %c128_i32 = arith.constant 128 : i32
    %32 = vector.broadcast %c128_i32 : i32 to vector<8x128xi32>
    %33 = arith.muli %31, %32 : vector<8x128xi32>
    %34 = arith.addi %33, %28 : vector<8x128xi32>
    %c512_i32 = arith.constant 512 : i32
    %35 = vector.broadcast %c512_i32 : i32 to vector<8x128xi32>
    %36 = arith.cmpi slt, %34, %35 : vector<8x128xi32>
    %37 = arith.extui %36 : vector<8x128xi1> to vector<8x128xi32>
    %38 = arith.sitofp %37 : vector<8x128xi32> to vector<8x128xf32>
    %39 = arith.mulf %13, %38 : vector<8x128xf32>
    %40 = arith.mulf %1, %38 : vector<8x128xf32>
    %41 = arith.mulf %26, %38 : vector<8x128xf32>
    %42 = arith.mulf %39, %40 : vector<8x128xf32>
    %cst_9 = arith.constant dense<0.000000e+00> : vector<128xf32>
    %43 = vector.multi_reduction <add>, %42, %cst_9 [0] : vector<8x128xf32> to vector<128xf32>
    %44 = vector.shape_cast %43 : vector<128xf32> to vector<1x128xf32>
    %cst_10 = arith.constant dense<0.000000e+00> : vector<128xf32>
    %45 = vector.multi_reduction <add>, %39, %cst_10 [0] : vector<8x128xf32> to vector<128xf32>
    %46 = vector.shape_cast %45 : vector<128xf32> to vector<1x128xf32>
    %cst_11 = arith.constant dense<0.000000e+00> : vector<128xf32>
    %47 = vector.multi_reduction <add>, %40, %cst_11 [0] : vector<8x128xf32> to vector<128xf32>
    %48 = vector.shape_cast %47 : vector<128xf32> to vector<1x128xf32>
    %cst_12 = arith.constant dense<0.000000e+00> : vector<128xf32>
    %49 = vector.multi_reduction <add>, %41, %cst_12 [0] : vector<8x128xf32> to vector<128xf32>
    %50 = vector.shape_cast %49 : vector<128xf32> to vector<1x128xf32>
    %51 = tpu.concatenate %44, %46, %48, %50 in 0 : vector<1x128xf32>, vector<1x128xf32>, vector<1x128xf32>, vector<1x128xf32> -> vector<4x128xf32>
    %52 = vector.shape_cast %51 : vector<4x128xf32> to vector<1x4x128xf32>
    %c0_13 = arith.constant 0 : index
    %c0_14 = arith.constant 0 : index
    %c0_15 = arith.constant 0 : index
    %53 = vector.load %arg3[%c0_13, %c0_14, %c0_15] : memref<1x4x128xf32, #tpu.memory_space<vmem>>, vector<1x4x128xf32>
    tpu.vector_store %arg3[%c0_13, %c0_14, %c0_15], %52 {strides = array<i32>} : memref<1x4x128xf32, #tpu.memory_space<vmem>>, vector<1x4x128xf32>,
    return
  }
  func.func @transform_0(%arg0: i32) -> (i32, i32) {
    %c0_i32 = arith.constant 0 : i32
    %c0_i32_0 = arith.constant 0 : i32
    return %arg0, %c0_i32 : i32, i32
  }
  func.func @transform_1(%arg0: i32) -> (i32, i32) {
    %c0_i32 = arith.constant 0 : i32
    %c0_i32_0 = arith.constant 0 : i32
    return %arg0, %c0_i32 : i32, i32
  }
  func.func @transform_2(%arg0: i32) -> (i32, i32, i32) {
    %c0_i32 = arith.constant 0 : i32
    %c0_i32_0 = arith.constant 0 : i32
    %c0_i32_1 = arith.constant 0 : i32
    return %arg0, %c0_i32, %c0_i32_0 : i32, i32, i32
  }
}

</mosaic_0001>

<bundles_post_ra>
// kernel: combined_loss.1
= control target key start
LH: loop header
LB: loop body
LE: loop exit
PB: predicated region body
PF: predicated region fallthrough
CT: control target
= control target key end

     0   :  { %v46_v4 = vlaneseq  ;;  %v106_v20 = vmov 0.0   ;;  %vm86_vm7 = vcmask 1040384   ;;  %vm88_vm8 = vcmask 1041408   ;;  %s131_s0 = inlined_call_operand.vmem [shape: f32[8,128], index: 0, kind: input, shape index: {}]   ;;  %s132_s1 = inlined_call_operand.vmem [shape: f32[8,128], index: 1, kind: input, shape index: {}]   ;;  %s133_s2 = inlined_call_operand.vmem [shape: f32[1,4,128], index: 2, kind: output, shape index: {}]  }
   0x1   :  { %v11_v0 = vld [vmem:[%s131_s0] sm:$0xff]  ;;  %vm90_vm9 = vcmask 1042432  }
   0x2   :  { %v13_v1 = vand.u32 2147483647, %v11_v0  ;;  %v47_v5 = vshrl.u32 %v46_v4, 7  ;;  %v49_v7 = vand.u32 127, %v46_v4  ;;  %v12_v10 = vld [vmem:[%s132_s1] sm:$0xff]  ;;  %v41_v12 = vmax.f32 %v11_v0, 0.0 }
   0x3   :  { %v42_v13 = vmul.f32 %v12_v10, %v11_v0  ;;  %vm38_vm0 = vcmp.ne.f32.partialorder %v12_v10, -100.0  ;;  %vm33_vm6 = vcmp.ge.f32.partialorder %v11_v0, 0.0 }
   0x4   :  { %v14_v2 = vsub.f32 0.0, %v13_v1  ;;  %v53_v8 = vmul.u32 128, %v47_v5  ;;  %v97_v21 = vsel %vm38_vm0, 1.0, %v106_v20 }
   0x5   :  { %v43_v15 = vsub.f32 %v41_v12, %v42_v13 }
   0x6   :  { %v15_v3 = vmul.f32 1.442695, %v14_v2  ;;  %v54_v11 = vadd.s32 %v53_v8, %v49_v7 }
   0x8   :  { %100 = vpow2.f32 %v15_v3  ;;  %vm55_vm1 = vcmp.lt.s32.totalorder %v54_v11, 512 }
   0x9   :  { %v98_v22 = vsel %vm55_vm1, 1.0, %v106_v20 }
   0xa   :  { %v59_v27 = vmul.f32 %v98_v22, %v12_v10 }
   0xc   :  { %v74_v31 = vrot.slane %v59_v27, 4 }
   0xe   :  { %v101_v6 = vpop.eup %100  ;;  %v75_v37 = vadd.f32 %v74_v31, %v59_v27 }
   0xf   :  { %v17_v9 = vadd.f32 1.0, %v101_v6 }
  0x10   :  { %v76_v41 = vrot.slane %v75_v37, 2 }
  0x11   :  { %102 = vrcp.f32 %v17_v9  ;;  %v29_v18 = vand.u32 2147483648, %v17_v9  ;;  %vm23_vm2 = vweird.f32 %v17_v9  ;;  %v27_v24 = vand.u32 2147483647, %v17_v9 }
  0x12   :  { %104 = vlog2.f32 %v17_v9  ;;  %v77_v47 = vadd.f32 %v76_v41, %v75_v37 }
  0x13   :  { %v30_v28 = vor.u32 1.1754944e-38, %v29_v18  ;;  %vm28_vm5 = vcmp.eq.f32.partialorder %v27_v24, 8.507059e+37 }
  0x14   :  { %v78_v53 = vrot.slane %v77_v47, 1 }
  0x16   :  { %v79_v59 = vadd.f32 %v78_v53, %v77_v47 }
  0x17   :  { %v103_v14 = vpop.eup %102 }
  0x18   :  { %v105_v16 = vpop.eup %104  ;;  %v19_v17 = vmul.f32 %v103_v14, %v17_v9  ;;  %vm24_vm3 = vweird.f32 %v103_v14 }
  0x19   :  { %v37_v19 = vmul.f32 0.6931472, %v105_v16  ;;  %vm25_vm4 = vmor %vm23_vm2, %vm24_vm3 }
  0x1a   :  { %v20_v23 = vsub.f32 1.0, %v19_v17 }
  0x1b   :  { %v44_v25 = vadd.f32 %v43_v15, %v37_v19 }
  0x1c   :  { %v21_v26 = vmul.f32 %v103_v14, %v20_v23 }
  0x1d   :  { %v45_v29 = vmul.f32 %v97_v21, %v44_v25 }
  0x1e   :  { %v22_v30 = vadd.f32 %v103_v14, %v21_v26 }
  0x1f   :  { %v60_v32 = vmul.f32 %v98_v22, %v45_v29 }
  0x20   :  { %v26_v33 = vsel %vm25_vm4, %v103_v14, %v22_v30 }
  0x21   :  { %v31_v34 = vsel %vm28_vm5, %v30_v28, %v26_v33  ;;  %v80_v35 = vrot.slane %v60_v32, 4 }
  0x22   :  { %v34_v36 = vmul.f32 %v101_v6, %v31_v34 }
  0x23   :  { %v81_v38 = vadd.f32 %v80_v35, %v60_v32 }
  0x24   :  { %v35_v39 = vsel %vm33_vm6, %v31_v34, %v34_v36 }
  0x25   :  { %v58_v40 = vmul.f32 %v98_v22, %v35_v39  ;;  %v82_v44 = vrot.slane %v81_v38, 2 }
  0x27   :  { %v61_v42 = vmul.f32 %v59_v27, %v58_v40  ;;  %v68_v43 = vrot.slane %v58_v40, 4  ;;  %v83_v50 = vadd.f32 %v82_v44, %v81_v38 }
  0x29   :  { %v62_v45 = vrot.slane %v61_v42, 4  ;;  %v69_v46 = vadd.f32 %v68_v43, %v58_v40  ;;  %v84_v56 = vrot.slane %v83_v50, 1 }
  0x2b   :  { %v63_v48 = vadd.f32 %v62_v45, %v61_v42  ;;  %v70_v49 = vrot.slane %v69_v46, 2  ;;  %v85_v61 = vadd.f32 %v84_v56, %v83_v50 }
  0x2d   :  { %v64_v51 = vrot.slane %v63_v48, 2  ;;  %v71_v52 = vadd.f32 %v70_v49, %v69_v46 }
  0x2f   :  { %v65_v54 = vadd.f32 %v64_v51, %v63_v48  ;;  %v72_v55 = vrot.slane %v71_v52, 1 }
  0x31   :  { %v66_v57 = vrot.slane %v65_v54, 1  ;;  %v73_v58 = vadd.f32 %v72_v55, %v71_v52 }
  0x33   :  { %v67_v60 = vadd.f32 %v66_v57, %v65_v54 }
  0x35   :  { %v87_v62 = vsel %vm86_vm7, %v67_v60, %v73_v58 }
  0x36   :  { %v89_v63 = vsel %vm88_vm8, %v87_v62, %v79_v59 }
  0x37   :  { %v91_v0 = vsel %vm90_vm9, %v89_v63, %v85_v61 }
  0x38   :  { %92 = vst [vmem:[%s133_s2] sm:$0xf] %v91_v0 }

</bundles_post_ra>
